<compile_context>
chip_gen: v7x
topology: tpu7x:2x2x1
jax: 0.10.0
libtpu: 0.0.40
codegen_flags: <defaults>
</compile_context>

<pallas_src>
import jax
import jax.numpy as jnp
from jax.experimental import pallas as pl
from jax.experimental.pallas import tpu as pltpu


def _vmem_capacity_bytes():
    """Generation-aware VMEM capacity; conservative v7x fallback."""
    try:
        cap = int(getattr(pltpu.get_tpu_info(), "vmem_capacity_bytes", 0))
        if cap > 0:
            return cap
    except Exception:
        pass
    return 64 * 1024 * 1024


def make_label_smoothing_loss(classes: int, smoothing: float = 0.5,
                              block_b: int | None = None,
                              target_tile_bytes: int = 4 * 1024 * 1024):
    """Returns loss_fn(pred (B, C), target (B,)) -> scalar f32.

    `block_b` optionally caps rows/tile (testing); default is bytes-based sizing.
    Feed `pred` as bfloat16 from the caller to halve HBM traffic; the kernel
    upcasts to f32 for all softmax math.
    """
    assert 0 <= smoothing < 1
    confidence = 1.0 - smoothing
    smooth_val = smoothing / classes

    def loss_fn(pred, target):
        B, C = pred.shape
        assert C == classes
        itemsize = jnp.dtype(pred.dtype).itemsize
        target2d = target.astype(jnp.int32).reshape(B, 1)

        # ---- Tile sizing (bytes-based, VMEM-accounted) ----------------------
        budget = int(0.70 * _vmem_capacity_bytes())
        bytes_per_row = (
            2 * C * itemsize      # pred tile, double-buffered
            + 2 * 128 * 4         # (r,1) i32 target, lane-padded to 128, double-buffered
            + 4 * C * 4           # f32 (r, C) intermediates (upcast / exp / weighted)
            + 6 * 128 * 4         # lane-padded (r,1) f32 row temporaries
        )
        tile_b = min(
            B,
            max(1, (budget - (2 << 20)) // bytes_per_row),
            max(1, target_tile_bytes // (C * itemsize)),
            16384,                # bound row-proportional padding overheads
        )
        if block_b is not None:
            tile_b = min(tile_b, block_b)
        if B < 8:
            tile_b = B
        else:
            tile_b = max(8, (tile_b // 8) * 8)

        n_blocks = -(-B // tile_b)
        # Megacore: shard the batch-block axis across TensorCores when the
        # block count splits evenly (harmless on 1-TC chips).
        n_outer = 2 if (n_blocks >= 2 and n_blocks % 2 == 0) else 1
        n_inner = n_blocks // n_outer
        grid = (n_outer, n_inner)

        vmem_needed = tile_b * bytes_per_row + (2 << 20)
        vmem_limit = int(min(max(vmem_needed, 32 * 1024 * 1024), max(budget, 32 * 1024 * 1024)))

        # ---- Kernel ---------------------------------------------------------
        def kernel(pred_ref, tgt_ref, out_ref, acc_ref):
            o = pl.program_id(0)
            i = pl.program_id(1)

            @pl.when(i == 0)
            def _():
                acc_ref[...] = jnp.zeros_like(acc_ref)

            p = pred_ref[...].astype(jnp.float32)                 # (tile_b, C)
            tgt = tgt_ref[...]                                    # (tile_b, 1) int32

            # Numerically stable row-wise logsumexp.
            m = jnp.max(p, axis=-1, keepdims=True)                # (tile_b, 1)
            lse = jnp.log(jnp.sum(jnp.exp(p - m), axis=-1, keepdims=True))
            m_lse = m + lse                                       # (tile_b, 1)

            # Merged weighted row-sum:
            #   smoothed = one_hot*confidence + smooth_val, sum(smoothed) == 1
            #   sum(smoothed * log_softmax(p)) = sum(w * p) - m_lse
            col = jax.lax.broadcasted_iota(jnp.int32, (tile_b, C), 1)
            w = jnp.where(col == tgt, confidence + smooth_val, smooth_val)
            wsum = jnp.sum(w * p, axis=-1, keepdims=True)         # (tile_b, 1)
            per_sample = m_lse - wsum                             # = -sum(smoothed*logp)

            # Mask rows beyond the true batch (ragged last tile / padding).
            blk = o * n_inner + i
            row = blk * tile_b + jax.lax.broadcasted_iota(jnp.int32, (tile_b, 1), 0)
            per_sample = jnp.where(row < B, per_sample, 0.0)

            acc_ref[...] += jnp.sum(per_sample, axis=(0, 1), keepdims=True)

            @pl.when(i == pl.num_programs(1) - 1)
            def _():
                out_ref[...] = acc_ref[...].reshape(1, 1, 1)

        partial = pl.pallas_call(
            kernel,
            out_shape=jax.ShapeDtypeStruct((n_outer, 1, 1), jnp.float32),
            grid_spec=pltpu.PrefetchScalarGridSpec(
                num_scalar_prefetch=0,
                grid=grid,
                in_specs=[
                    pl.BlockSpec((tile_b, C), lambda o, i: (o * n_inner + i, 0)),
                    pl.BlockSpec((tile_b, 1), lambda o, i: (o * n_inner + i, 0)),
                ],
                out_specs=pl.BlockSpec((1, 1, 1), lambda o, i: (o, 0, 0)),
                scratch_shapes=[pltpu.VMEM((1, 1), jnp.float32)],
            ),
            compiler_params=pltpu.CompilerParams(
                dimension_semantics=("parallel", "arbitrary"),
                vmem_limit_bytes=vmem_limit,
            ),
        )(pred, target2d)

        # Sum the per-outer-block partials and take the batch mean.
        return jnp.sum(partial) / B

    return loss_fn


def _reference(pred, target, classes, smoothing):
    confidence = 1.0 - smoothing
    one_hot = jax.nn.one_hot(target, classes, dtype=jnp.float32)
    smoothed = one_hot * confidence + smoothing / classes
    log_prob = jax.nn.log_softmax(pred.astype(jnp.float32), axis=-1)
    return jnp.mean(jnp.sum(-smoothed * log_prob, axis=-1))


if __name__ == "__main__":
    C = 128
    smoothing = 0.5
    key = jax.random.PRNGKey(0)
    kp, kt, kp2, kt2, kp3, kt3 = jax.random.split(key, 6)

    # Case 1: small tile override -> even block count -> 2-D (parallel, arbitrary) grid.
    loss_fn_small = make_label_smoothing_loss(classes=C, smoothing=smoothing, block_b=8)
    B = 32
    pred = jax.random.normal(kp, (B, C), dtype=jnp.float32)
    target = jax.random.randint(kt, (B,), 0, C, dtype=jnp.int32)
    loss = jax.block_until_ready(loss_fn_small(pred, target))
    ref = _reference(pred, target, C, smoothing)
    assert jnp.allclose(loss, ref, rtol=1e-4, atol=1e-4), (loss, ref)

    # Case 2: ragged last tile (B=20, tile=8, odd block count -> single outer block).
    B2 = 20
    pred2 = jax.random.normal(kp2, (B2, C), dtype=jnp.float32)
    target2 = jax.random.randint(kt2, (B2,), 0, C, dtype=jnp.int32)
    loss2 = jax.block_until_ready(loss_fn_small(pred2, target2))
    ref2 = _reference(pred2, target2, C, smoothing)
    assert jnp.allclose(loss2, ref2, rtol=1e-4, atol=1e-4), (loss2, ref2)

    # Case 3: automatic bytes-based tiling, bf16 pred (halved HBM traffic).
    loss_fn_auto = make_label_smoothing_loss(classes=C, smoothing=smoothing)
    B3 = 64
    pred3 = jax.random.normal(kp3, (B3, C), dtype=jnp.float32).astype(jnp.bfloat16)
    target3 = jax.random.randint(kt3, (B3,), 0, C, dtype=jnp.int32)
    loss3 = jax.block_until_ready(loss_fn_auto(pred3, target3))
    ref3 = _reference(pred3, target3, C, smoothing)
    assert jnp.allclose(loss3, ref3, rtol=1e-4, atol=1e-4), (loss3, ref3)

    print("KERNEL_OK")
</pallas_src>

<mosaic_0001>
module attributes {stable_mosaic.version = 11 : i64} {
  func.func @kernel(%arg0: i32, %arg1: i32, %arg2: memref<8x128xf32, #tpu.memory_space<vmem>>, %arg3: memref<8x1xi32, #tpu.memory_space<vmem>>, %arg4: memref<1x1x1xf32, #tpu.memory_space<vmem>>, %arg5: memref<1x1xf32, #tpu.memory_space<vmem>>) attributes {dimension_semantics = [#tpu.dimension_semantics<parallel>, #tpu.dimension_semantics<arbitrary>], iteration_bounds = array<i64: 2, 2>, scalar_prefetch = 0 : i64, scratch_operands = 1 : i64, tpu.core_type = #tpu.core_type<tc>, window_params = [{transform_indices = @transform_0, window_bounds = array<i64: 8, 128>}, {transform_indices = @transform_1, window_bounds = array<i64: 8, 1>}, {transform_indices = @transform_2, window_bounds = array<i64: 1, 1, 1>}]} {
    %c0_i32 = arith.constant 0 : i32
    %0 = arith.cmpi eq, %arg1, %c0_i32 : i32
    %1 = arith.extui %0 : i1 to i32
    %c0_i32_0 = arith.constant 0 : i32
    %2 = arith.cmpi ne, %1, %c0_i32_0 : i32
    scf.if %2 {
      %cst_15 = arith.constant 0.000000e+00 : f32
      %45 = vector.broadcast %cst_15 : f32 to vector<1x1xf32>
      %c0_16 = arith.constant 0 : index
      %c0_17 = arith.constant 0 : index
      %46 = vector.load %arg5[%c0_16, %c0_17] : memref<1x1xf32, #tpu.memory_space<vmem>>, vector<1x1xf32>
      tpu.vector_store %arg5[%c0_16, %c0_17], %45 {strides = array<i32>} : memref<1x1xf32, #tpu.memory_space<vmem>>, vector<1x1xf32>,
    } else {
    }
    %c0 = arith.constant 0 : index
    %c0_1 = arith.constant 0 : index
    %3 = vector.load %arg2[%c0, %c0_1] : memref<8x128xf32, #tpu.memory_space<vmem>>, vector<8x128xf32>
    %c0_2 = arith.constant 0 : index
    %c0_3 = arith.constant 0 : index
    %4 = vector.load %arg3[%c0_2, %c0_3] : memref<8x1xi32, #tpu.memory_space<vmem>>, vector<8x1xi32>
    %cst = arith.constant dense<0xFF800000> : vector<8xf32>
    %5 = vector.multi_reduction <maximumf>, %3, %cst [1] : vector<8x128xf32> to vector<8xf32>
    %6 = vector.shape_cast %5 : vector<8xf32> to vector<8x1xf32>
    %7 = vector.broadcast %6 : vector<8x1xf32> to vector<8x128xf32>
    %8 = arith.subf %3, %7 : vector<8x128xf32>
    %9 = math.exp %8 : vector<8x128xf32>
    %cst_4 = arith.constant dense<0.000000e+00> : vector<8xf32>
    %10 = vector.multi_reduction <add>, %9, %cst_4 [1] : vector<8x128xf32> to vector<8xf32>
    %11 = vector.shape_cast %10 : vector<8xf32> to vector<8x1xf32>
    %12 = math.log %11 : vector<8x1xf32>
    %13 = arith.addf %6, %12 : vector<8x1xf32>
    %14 = tpu.iota {dimensions = array<i32: 1>} : vector<8x128xi32>
    %15 = vector.broadcast %4 : vector<8x1xi32> to vector<8x128xi32>
    %16 = arith.cmpi eq, %14, %15 : vector<8x128xi32>
    %cst_5 = arith.constant 0.50390625 : f32
    %cst_6 = arith.constant 3.906250e-03 : f32
    %17 = vector.broadcast %cst_5 : f32 to vector<8x128xf32>
    %18 = vector.broadcast %cst_6 : f32 to vector<8x128xf32>
    %19 = arith.select %16, %17, %18 : vector<8x128xi1>, vector<8x128xf32>
    %20 = arith.mulf %19, %3 : vector<8x128xf32>
    %cst_7 = arith.constant dense<0.000000e+00> : vector<8xf32>
    %21 = vector.multi_reduction <add>, %20, %cst_7 [1] : vector<8x128xf32> to vector<8xf32>
    %22 = vector.shape_cast %21 : vector<8xf32> to vector<8x1xf32>
    %23 = arith.subf %13, %22 : vector<8x1xf32>
    %c2_i32 = arith.constant 2 : i32
    %24 = arith.muli %arg0, %c2_i32 : i32
    %25 = arith.addi %24, %arg1 : i32
    %c8_i32 = arith.constant 8 : i32
    %26 = arith.muli %25, %c8_i32 : i32
    %27 = tpu.iota {dimensions = array<i32: 0>} : vector<8x1xi32>
    %28 = vector.broadcast %26 : i32 to vector<8x1xi32>
    %29 = arith.addi %28, %27 : vector<8x1xi32>
    %c32_i32 = arith.constant 32 : i32
    %30 = vector.broadcast %c32_i32 : i32 to vector<8x1xi32>
    %31 = arith.cmpi slt, %29, %30 : vector<8x1xi32>
    %cst_8 = arith.constant 0.000000e+00 : f32
    %32 = vector.broadcast %cst_8 : f32 to vector<8x1xf32>
    %33 = arith.select %31, %23, %32 : vector<8x1xi1>, vector<8x1xf32>
    %c0_9 = arith.constant 0 : index
    %c0_10 = arith.constant 0 : index
    %34 = vector.load %arg5[%c0_9, %c0_10] : memref<1x1xf32, #tpu.memory_space<vmem>>, vector<1x1xf32>
    %35 = vector.shape_cast %33 : vector<8x1xf32> to vector<1x8x1xf32>
    %cst_11 = arith.constant dense<0.000000e+00> : vector<1xf32>
    %36 = vector.multi_reduction <add>, %35, %cst_11 [1, 2] : vector<1x8x1xf32> to vector<1xf32>
    %37 = vector.shape_cast %36 : vector<1xf32> to vector<1x1x1xf32>
    %38 = vector.extract %37[0, 0, 0] : f32 from vector<1x1x1xf32>
    %39 = vector.broadcast %38 : f32 to vector<1x1xf32>
    %40 = arith.addf %34, %39 : vector<1x1xf32>
    %c0_12 = arith.constant 0 : index
    %c0_13 = arith.constant 0 : index
    %41 = vector.load %arg5[%c0_12, %c0_13] : memref<1x1xf32, #tpu.memory_space<vmem>>, vector<1x1xf32>
    tpu.vector_store %arg5[%c0_12, %c0_13], %40 {strides = array<i32>} : memref<1x1xf32, #tpu.memory_space<vmem>>, vector<1x1xf32>,
    %c1_i32 = arith.constant 1 : i32
    %42 = arith.cmpi eq, %arg1, %c1_i32 : i32
    %43 = arith.extui %42 : i1 to i32
    %c0_i32_14 = arith.constant 0 : i32
    %44 = arith.cmpi ne, %43, %c0_i32_14 : i32
    scf.if %44 {
      %c0_15 = arith.constant 0 : index
      %c0_16 = arith.constant 0 : index
      %45 = vector.load %arg5[%c0_15, %c0_16] : memref<1x1xf32, #tpu.memory_space<vmem>>, vector<1x1xf32>
      %46 = vector.shape_cast %45 : vector<1x1xf32> to vector<1x1x1xf32>
      %c0_17 = arith.constant 0 : index
      %c0_18 = arith.constant 0 : index
      %c0_19 = arith.constant 0 : index
      %47 = vector.load %arg4[%c0_17, %c0_18, %c0_19] : memref<1x1x1xf32, #tpu.memory_space<vmem>>, vector<1x1x1xf32>
      tpu.vector_store %arg4[%c0_17, %c0_18, %c0_19], %46 {strides = array<i32>} : memref<1x1x1xf32, #tpu.memory_space<vmem>>, vector<1x1x1xf32>,
    } else {
    }
    return
  }
  func.func @transform_0(%arg0: i32, %arg1: i32) -> (i32, i32) {
    %c2_i32 = arith.constant 2 : i32
    %0 = arith.muli %arg0, %c2_i32 : i32
    %1 = arith.addi %0, %arg1 : i32
    %c0_i32 = arith.constant 0 : i32
    %c0_i32_0 = arith.constant 0 : i32
    return %1, %c0_i32 : i32, i32
  }
  func.func @transform_1(%arg0: i32, %arg1: i32) -> (i32, i32) {
    %c2_i32 = arith.constant 2 : i32
    %0 = arith.muli %arg0, %c2_i32 : i32
    %1 = arith.addi %0, %arg1 : i32
    %c0_i32 = arith.constant 0 : i32
    %c0_i32_0 = arith.constant 0 : i32
    return %1, %c0_i32 : i32, i32
  }
  func.func @transform_2(%arg0: i32, %arg1: i32) -> (i32, i32, i32) {
    %c0_i32 = arith.constant 0 : i32
    %c0_i32_0 = arith.constant 0 : i32
    %c0_i32_1 = arith.constant 0 : i32
    return %arg0, %c0_i32, %c0_i32_0 : i32, i32, i32
  }
}

</mosaic_0001>

<bundles_post_ra>
// kernel: tpu_custom_call.1
= control target key start
LH: loop header
LB: loop body
LE: loop exit
PB: predicated region body
PF: predicated region fallthrough
CT: control target
= control target key end

     0   :  { %s451_s9 = smov 0   ;;  %s453_s10 = smov 0   ;;  %s523_s0 = inlined_call_operand.vmem [shape: f32[32,128], index: 0, kind: input, shape index: {}]   ;;  %s524_s1 = inlined_call_operand.vmem [shape: s32[32,1], index: 1, kind: input, shape index: {}]   ;;  %s525_s2 = inlined_call_operand.vmem [shape: f32[2,1,1], index: 2, kind: output, shape index: {}]  }
   0x1   :  { %s455_s11 = smov 0   ;;  %s457_s12 = smov 0  }
   0x2   :  { %s459_s13 = smov 0  }
   0x3 LB: > { %s21_s14 = sadd.s32 1, %s423_s11  ;;  %s24_s15 = sadd.s32 1, %s427_s12  ;;  %s431_s13 = sphi %s459_s13, %s12_s13   ;;  %s427_s12 = sphi %s457_s12, %s529_s12   ;;  %s423_s11 = sphi %s455_s11, %s528_s11   ;;  %s419_s10 = sphi %s453_s10, %s527_s10   ;;  %s415_s9 = sphi %s451_s9, %s526_s9  }
   0x4   : > { %p22_p0 = scmp.ge.s32.totalorder %s21_s14, 2  ;;  %p332_p1 = scmp.ge.s32.totalorder %s431_s13, 1 }
   0x5   : > { %p148_p2 = scmp.lt.s32.totalorder %s431_s13, 5 }
   0x6   : > { %s531_s14 = smov (%p22_p0, %s21_s14), 0  ;;  %s533_s15 = smov (!%p22_p0, %s24_s15), %s427_s12 }
   0x7   : > { %p149_p3 = pnand %p332_p1, %p148_p2  ;;  %p26_p4 = scmp.ge.s32.totalorder %s533_s15, 2 }
   0x8   : > { %s333_s16 = sshll.u32 (!%p149_p3), %s419_s10, 1  ;;  %p191_p5 = scmp.lt.s32.totalorder (!%p149_p3), %s419_s10, 1 }
   0x9   : > { %s535_s15 = smov (%p26_p4, %s533_s15), 0  ;;  %152 = sbr.rel (%p149_p3) target bundleno = 558 (0x22e), region = 28 }
   0xa   : > { %s484_s17 = sadd.s32 (!%p149_p3), %s415_s9, %s333_s16  ;;  %p337_p7 = scmp.ne.s32.totalorder (!%p149_p3), %s415_s9, 0 }
   0xb   : > { %p177_p6 = scmp.lt.s32.totalorder (!%p149_p3), %s484_s17, 3 }
  0x10   : > { %s537_s10 = smov (!%p191_p5, %s419_s10), 1  ;;  %197 = sbr.rel (%p337_p7) target bundleno = 23 (0x17), region = 32 }
  0x11   : > { %s178_s18 = scalar_select %p177_p6, %s484_s17, 3 }
  0x12   : > { %s193_s21 = scalar_lea.vmem %s525_s2, %s537_s10  ;;  %vm198_vm0 = vcmask (!%p337_p7), 0   ;;  %v433_v0 = vmov (!%p337_p7), 0.0  }
  0x13   : > { %s334_s22 = sshll.u32 %s178_s18, 3  ;;  %199 = vst.msk [vmem:[#allocation2] sm:$0x1] (!%p337_p7), %vm198_vm0, %v433_v0 }
  0x14   : > { %s180_s25 = scalar_lea.vmem %s523_s0, %s334_s22  ;;  %s188_s28 = scalar_lea.vmem %s524_s1, %s334_s22 }
  0x17 PF: > { %v200_v1 = vld [vmem:[%s180_s25] sm:$0xff]  ;;  %v434_v2 = vmov 0   ;;  %v212_v6 = vlaneseq  ;;  %v435_v10 = vmov 0.00390625   ;;  %s339_s29 = sshll.u32 %s484_s17, 3  ;;  %vm233_vm3 = vcmask 7168   ;;  %p340_p8 = scmp.ne.s32.totalorder %s415_s9, 1 }
  0x18   : > { %202 = vmax.xlane.f32.xlu0 %v200_v1  ;;  %v201_v3 = vld [vmem:[%s188_s28] sm:$0xff]  ;;  %v228_v16 = vstv %s339_s29  ;;  %vm246_vm4 = vcmask 0  }
  0x19   : > { %388 = vset.pattern.permute.xlu0 %v434_v2  ;;  %v213_v8 = vand.u32 127, %v212_v6  ;;  %v227_v15 = vshrl.u32 %v212_v6, 7 }
  0x1a   : > { %v232_v32 = vld [vmem:[#allocation2] sm:$0x1] }
  0x1b   : > { %v229_v18 = vadd.s32 %v228_v16, %v227_v15 }
  0x1d   : > { %vm230_vm2 = vcmp.lt.s32.totalorder %v229_v18, 32 }
  0x2e   : > { %215 = vperm.xlu0 %388, %v201_v3  }
  0xa5   : > { %v203_v4 = vpop.xlane.xlu0 %202 }
  0xa6   : > { %v204_v5 = vsub.f32 %v200_v1, %v203_v4 }
  0xa8   : > { %v205_v7 = vmul.f32 1.442695, %v204_v5 }
  0xaa   : > { %389 = vpow2.f32 %v205_v7 }
  0xad   : > { %v216_v9 = vpop.permute.xlu0 %215 }
  0xae   : > { %vm217_vm1 = vcmp.eq.s32.totalorder %v213_v8, %v216_v9 }
  0xaf   : > { %v218_v11 = vsel %vm217_vm1, 0.50390625, %v435_v10 }
  0xb0   : > { %v219_v13 = vmul.f32 %v218_v11, %v200_v1 }
  0xb4   : > { %v390_v12 = vpop.eup %389 }
  0xb5   : > { %207 = vadd.xlane.f32.xlu1 %v390_v12 }
  0xb9   : > { %220 = vadd.xlane.f32.xlu1 %v219_v13 }
 0x142   : > { %v208_v14 = vpop.xlane.xlu1 %207 }
 0x143   : > { %391 = vlog2.f32 %v208_v14 }
 0x146   : > { %v221_v20 = vpop.xlane.xlu1 %220 }
 0x14d   : > { %v392_v17 = vpop.eup %391 }
 0x14e   : > { %v210_v19 = vmul.f32 0.6931472, %v392_v17 }
 0x150   : > { %v211_v21 = vadd.f32 %v210_v19, %v203_v4 }
 0x152   : > { %v222_v22 = vsub.f32 %v211_v21, %v221_v20 }
 0x154   : > { %v231_v23 = vsel %vm230_vm2, %v222_v22, 0.0 }
 0x155   : > { %v234_v24 = vsel %vm233_vm3, %v231_v23, 0.0 }
 0x156   : > { %235 = vadd.xlane.f32.xlu1 %v234_v24 }
 0x1e3   : > { %v236_v25 = vpop.xlane.xlu1 %235 }
 0x1e4   : > { %v237_v26 = vrot.slane %v236_v25, 4 }
 0x1e6   : > { %v238_v27 = vadd.f32 %v237_v26, %v236_v25 }
 0x1e8   : > { %v239_v28 = vrot.slane %v238_v27, 2 }
 0x1ea   : > { %v240_v29 = vadd.f32 %v239_v28, %v238_v27 }
 0x1ec   : > { %v241_v30 = vrot.slane %v240_v29, 1 }
 0x1ee   : > { %v242_v31 = vadd.f32 %v241_v30, %v240_v29 }
 0x1f0   : > { %343 = vpush %v242_v31 }
 0x21f   : > { %251 = sbr.rel (%p340_p8) target bundleno = 558 (0x22e), region = 36 }
 0x221   : > { %s344_s30 = spop %343 }
 0x222   : > { %v244_v33 = vstv %s344_s30 }
 0x223   : > { %v245_v34 = vadd.f32 %v244_v33, %v232_v32 }
 0x225   : > { %247 = vst.msk [vmem:[#allocation2] sm:$0x1] %vm246_vm4, %v245_v34 }
 0x22c   : > { %v252_v35 = vld [vmem:[#allocation2] sm:$0x1] }
 0x22d   : > { %253 = vst.msk [vmem:[%s193_s21] sm:$0x1] %vm246_vm4, %v252_v35 }
 0x22e PF: > { %s12_s13 = sadd.s32 1, %s431_s13   ;;  %s526_s9 = smov %s423_s11 }
 0x22f   : > { %p9_p9 = scmp.ge.s32.totalorder %s12_s13, 6   ;;  %s527_s10 = smov %s427_s12 }
 0x230   : > { %s528_s11 = smov %s531_s14  ;;  %s529_s12 = smov %s535_s15 }
 0x231   :  { %11 = sbr.rel (!%p9_p9) target bundleno = 3 (0x3), region = 69 }

</bundles_post_ra>
